<compile_context>
chip_gen: v7x
topology: tpu7x:2x2x1
jax: 0.10.0
libtpu: 0.0.40
codegen_flags: <defaults>
</compile_context>

<pallas_src>
import functools

import jax
import jax.numpy as jnp
from jax import lax
from jax.experimental import pallas as pl
from jax.experimental.pallas import tpu as pltpu

EMBED_DIM = 32
INV_SCALE = 1.0 / (float(EMBED_DIM) ** 0.5)
LANE = 128  # TPU lane width; q/k/v chunks are padded to this for tile-aligned slices.


def head_kernel(x_ref, wqkv_ref, o_ref, *, B, T, C):
    """x_ref: (B*T, C) f32.  wqkv_ref: (C, 3*LANE) f32 (zero-padded per chunk).
    o_ref: (B*T, LANE) f32 (lane-dense; only first C columns meaningful)."""
    x2d = x_ref[...]                                                # (B*T, C)

    # Single fused projection: (B*T, C) @ (C, 3*LANE).
    qkv = jnp.dot(x2d, wqkv_ref[...],
                  preferred_element_type=jnp.float32)               # (B*T, 3*LANE)

    # Lane-tile-aligned slices (offsets 0 / 128 / 256) -> no XLU shuffles.
    q = qkv[:, 0 * LANE:1 * LANE].reshape(B, T, LANE)
    k = qkv[:, 1 * LANE:2 * LANE].reshape(B, T, LANE)
    v = qkv[:, 2 * LANE:3 * LANE].reshape(B, T, LANE)

    # Scaled attention scores.  Contraction over the last dim of BOTH operands
    # -> no materialized transpose of k.  Padded lanes are zero in q and k, so
    # they contribute exactly 0 to the dot product.
    att = jnp.einsum('bqd,bkd->bqk', q, k,
                     preferred_element_type=jnp.float32) * INV_SCALE  # (B, T, T)

    # Causal (lower-triangular) mask, built once at (1, T, T) and broadcast
    # over B.  Finite large-negative fill keeps softmax NaN-free even for a
    # hypothetical fully-masked row.
    row = lax.broadcasted_iota(jnp.int32, (1, T, T), 1)
    col = lax.broadcasted_iota(jnp.int32, (1, T, T), 2)
    neg = jnp.finfo(jnp.float32).min
    att = jnp.where(col <= row, att, neg)

    # Numerically-stable softmax over the last dim (exact divide).
    att = att - jnp.max(att, axis=-1, keepdims=True)
    e = jnp.exp(att)
    wei = e / jnp.sum(e, axis=-1, keepdims=True)

    # Dropout = identity (eval mode).

    out = jnp.einsum('bqk,bkd->bqd', wei, v,
                     preferred_element_type=jnp.float32)            # (B, T, LANE)

    # Lane-dense (128-wide) unmasked store.
    o_ref[...] = out.reshape(B * T, LANE).astype(o_ref.dtype)


def fuse_qkv_weights(wq, wk, wv, lane=LANE):
    """PyTorch Linear weights are (out, in).  Transpose, pad each chunk's
    output dim to `lane` columns (zeros), and concatenate ONCE at init time,
    so the kernel's q/k/v lane slices are tile-aligned."""
    C = wq.shape[1]
    pad = lane - C

    def prep(w):
        return jnp.pad(w.T, ((0, 0), (0, pad)))                     # (C, lane)

    return jnp.concatenate([prep(wq), prep(wk), prep(wv)], axis=1)  # (C, 3*lane)


def head_forward(x, wqkv):
    """x: (B, T, C) float32; wqkv: (C, 3*LANE) pre-fused, pre-padded weights."""
    B, T, C = x.shape
    x2d = x.reshape(B * T, C)                                       # free layout plumbing

    out2d = pl.pallas_call(
        functools.partial(head_kernel, B=B, T=T, C=C),
        out_shape=jax.ShapeDtypeStruct((B * T, LANE), x.dtype),
        in_specs=[
            pl.BlockSpec(memory_space=pltpu.MemorySpace.VMEM),
            pl.BlockSpec(memory_space=pltpu.MemorySpace.VMEM),
        ],
        out_specs=pl.BlockSpec(memory_space=pltpu.MemorySpace.VMEM),
    )(x2d, wqkv)

    return out2d[:, :C].reshape(B, T, C)


def head_reference(x, wq, wk, wv):
    q = x @ wq.T
    k = x @ wk.T
    v = x @ wv.T
    att = q @ jnp.swapaxes(k, -1, -2) * INV_SCALE
    T = x.shape[1]
    mask = jnp.tril(jnp.ones((T, T), dtype=bool))
    att = jnp.where(mask, att, -jnp.inf)
    wei = jax.nn.softmax(att, axis=-1)
    return wei @ v


if __name__ == "__main__":
    B, T, C = 2, 8, EMBED_DIM
    key = jax.random.PRNGKey(0)
    kx, kq, kk, kv = jax.random.split(key, 4)

    x = jax.random.normal(kx, (B, T, C), dtype=jnp.float32)
    # Deterministic weight init (PyTorch Linear-style (out, in) shape).
    bound = 1.0 / (C ** 0.5)
    wq = jax.random.uniform(kq, (C, C), jnp.float32, -bound, bound)
    wk = jax.random.uniform(kk, (C, C), jnp.float32, -bound, bound)
    wv = jax.random.uniform(kv, (C, C), jnp.float32, -bound, bound)

    # Fuse + pad once (init-time), not per forward call.
    wqkv = fuse_qkv_weights(wq, wk, wv)

    out = head_forward(x, wqkv)
    out = jax.block_until_ready(out)

    ref = head_reference(x, wq, wk, wv)
    assert out.shape == (B, T, C)
    assert jnp.allclose(out, ref, atol=1e-3, rtol=1e-3), "mismatch vs reference"

    print("KERNEL_OK")
</pallas_src>

<mosaic_0001>
module attributes {stable_mosaic.version = 11 : i64} {
  func.func @head_kernel(%arg0: memref<16x32xf32, #tpu.memory_space<vmem>>, %arg1: memref<32x384xf32, #tpu.memory_space<vmem>>, %arg2: memref<16x128xf32, #tpu.memory_space<vmem>>) attributes {dimension_semantics = [], scalar_prefetch = 0 : i64, scratch_operands = 0 : i64, tpu.core_type = #tpu.core_type<tc>} {
    %c0 = arith.constant 0 : index
    %c0_0 = arith.constant 0 : index
    %0 = vector.load %arg0[%c0, %c0_0] : memref<16x32xf32, #tpu.memory_space<vmem>>, vector<16x32xf32>
    %c0_1 = arith.constant 0 : index
    %c0_2 = arith.constant 0 : index
    %1 = vector.load %arg1[%c0_1, %c0_2] : memref<32x384xf32, #tpu.memory_space<vmem>>, vector<32x384xf32>
    %cst = arith.constant dense<0.000000e+00> : vector<16x384xf32>
    %2 = tpu.matmul %0, %1, %cst {dimension_numbers = #tpu.dot_dimension_numbers<[1], [0], [0], [1], [0, 0, 1, 1], [], []>} : vector<16x32xf32>, vector<32x384xf32>, vector<16x384xf32> -> vector<16x384xf32>
    %3 = vector.extract_strided_slice %2 {offsets = [0, 0], sizes = [16, 128], strides = [1, 1]} : vector<16x384xf32> to vector<16x128xf32>
    %4 = vector.shape_cast %3 : vector<16x128xf32> to vector<2x8x128xf32>
    %5 = vector.extract_strided_slice %2 {offsets = [0, 128], sizes = [16, 128], strides = [1, 1]} : vector<16x384xf32> to vector<16x128xf32>
    %6 = vector.shape_cast %5 : vector<16x128xf32> to vector<2x8x128xf32>
    %7 = vector.extract_strided_slice %2 {offsets = [0, 256], sizes = [16, 128], strides = [1, 1]} : vector<16x384xf32> to vector<16x128xf32>
    %8 = vector.shape_cast %7 : vector<16x128xf32> to vector<2x8x128xf32>
    "tpu.trace_start"() <{level = 10 : i32, message = "bqd,bkd->bqk"}> : () -> ()
    %cst_3 = arith.constant dense<0.000000e+00> : vector<2x8x8xf32>
    %9 = tpu.matmul %4, %6, %cst_3 {dimension_numbers = #tpu.dot_dimension_numbers<[2], [2], [1], [1], [0, 0, 0, 1, 1, 1], [0], [0]>} : vector<2x8x128xf32>, vector<2x8x128xf32>, vector<2x8x8xf32> -> vector<2x8x8xf32>
    "tpu.trace_stop"() : () -> ()
    %cst_4 = arith.constant 0.176776692 : f32
    %10 = vector.broadcast %cst_4 : f32 to vector<2x8x8xf32>
    %11 = arith.mulf %9, %10 : vector<2x8x8xf32>
    %12 = tpu.iota {dimensions = array<i32: 1>} : vector<1x8x8xi32>
    %13 = tpu.iota {dimensions = array<i32: 2>} : vector<1x8x8xi32>
    %14 = arith.cmpi sle, %13, %12 : vector<1x8x8xi32>
    %cst_5 = arith.constant -3.40282347E+38 : f32
    %15 = vector.shape_cast %14 : vector<1x8x8xi1> to vector<1x8x8xi1>
    %16 = vector.broadcast %15 : vector<1x8x8xi1> to vector<2x8x8xi1>
    %17 = vector.broadcast %cst_5 : f32 to vector<2x8x8xf32>
    %18 = arith.select %16, %11, %17 : vector<2x8x8xi1>, vector<2x8x8xf32>
    %cst_6 = arith.constant dense<0xFF800000> : vector<2x8xf32>
    %19 = vector.multi_reduction <maximumf>, %18, %cst_6 [2] : vector<2x8x8xf32> to vector<2x8xf32>
    %20 = vector.shape_cast %19 : vector<2x8xf32> to vector<2x8x1xf32>
    %21 = vector.broadcast %20 : vector<2x8x1xf32> to vector<2x8x8xf32>
    %22 = arith.subf %18, %21 : vector<2x8x8xf32>
    %23 = math.exp %22 : vector<2x8x8xf32>
    %cst_7 = arith.constant dense<0.000000e+00> : vector<2x8xf32>
    %24 = vector.multi_reduction <add>, %23, %cst_7 [2] : vector<2x8x8xf32> to vector<2x8xf32>
    %25 = vector.shape_cast %24 : vector<2x8xf32> to vector<2x8x1xf32>
    %26 = vector.broadcast %25 : vector<2x8x1xf32> to vector<2x8x8xf32>
    %27 = arith.divf %23, %26 : vector<2x8x8xf32>
    "tpu.trace_start"() <{level = 10 : i32, message = "bqk,bkd->bqd"}> : () -> ()
    %cst_8 = arith.constant dense<0.000000e+00> : vector<2x8x128xf32>
    %28 = tpu.matmul %27, %8, %cst_8 {dimension_numbers = #tpu.dot_dimension_numbers<[2], [1], [1], [2], [0, 0, 0, 1, 1, 2], [0], [0]>} : vector<2x8x8xf32>, vector<2x8x128xf32>, vector<2x8x128xf32> -> vector<2x8x128xf32>
    "tpu.trace_stop"() : () -> ()
    %29 = vector.shape_cast %28 : vector<2x8x128xf32> to vector<16x128xf32>
    %c0_9 = arith.constant 0 : index
    %c0_10 = arith.constant 0 : index
    %30 = vector.load %arg2[%c0_9, %c0_10] : memref<16x128xf32, #tpu.memory_space<vmem>>, vector<16x128xf32>
    tpu.vector_store %arg2[%c0_9, %c0_10], %29 {strides = array<i32>} : memref<16x128xf32, #tpu.memory_space<vmem>>, vector<16x128xf32>,
    return
  }
}

</mosaic_0001>

<bundles_post_ra>
// kernel: tpu_custom_call.1
= control target key start
LH: loop header
LB: loop body
LE: loop exit
PB: predicated region body
PF: predicated region fallthrough
CT: control target
= control target key end

     0   :  { %7 = vsyncpa [#allocation3], 0  ;;  %s789_s0 = inlined_call_operand.hbm [shape: f32[16,32], index: 0, kind: input, shape index: {}]   ;;  %s790_s1 = inlined_call_operand.hbm [shape: f32[32,384], index: 1, kind: input, shape index: {}]   ;;  %s791_s2 = inlined_call_operand.hbm [shape: f32[16,128], index: 2, kind: output, shape index: {}]  }
   0x1   :  { %8 = vsyncpa [#allocation6], 0 }
   0x2   :  { %9 = vsyncpa [#allocation4], 0  ;;  %s709_s9 = smov [#allocation2]   ;;  %s637_s13 = scalar_lea.hbm %s789_s0, 256 }
   0x3   :  { %s15_s10 = sshll.u32 %s709_s9, 4  ;;  %p638_p0 = scmp.ne.s32.totalorder %s789_s0, %s637_s13  ;;  %s16_s10 = int_to_ptr.vmem [resolvable:$true] %s15_s10 }
   0x4   :  { %p641_p1 = scmp.lt.u32.totalorder %s637_s13, %s789_s0 }
   0x6   :  { %p643_p2 = pnand %p641_p1, %p638_p0 }
   0x8   :  { %646 = shalt.err (!%p643_p2)
}
   0x9   :  { %s647_s18 = scalar_lea.vmem %s16_s10, 256  ;;  %p652_p4 = scmp.lt.s32.totalorder %s16_s10, %s16_s10 }
   0xa   :  { %p648_p3 = scmp.ne.s32.totalorder %s16_s10, %s647_s18  ;;  %p653_p5 = scmp.lt.s32.totalorder %s647_s18, %s647_s18 }
   0xc   :  { %p654_p6 = por %p653_p5, %p652_p4 }
   0xe   :  { %p655_p7 = pnand %p654_p6, %p648_p3 }
  0x10   :  { %658 = shalt.err (!%p655_p7)
}
  0x11   :  { %s710_s19 = smov 128   ;;  %s711_s20 = smov 8  }
  0x12   :  { %21 = dma.hbm_to_vmem [thread:$0]  %s789_s0, 256, %s16_s10, [#allocation3], %s710_s19, %s710_s19, %s711_s20  }
  0x13   :  { %s712_s23 = smov [#allocation5]   ;;  %s659_s27 = scalar_lea.hbm %s790_s1, 1536 }
  0x14   :  { %s27_s24 = sshll.u32 %s712_s23, 4  ;;  %p660_p8 = scmp.ne.s32.totalorder %s790_s1, %s659_s27  ;;  %s28_s24 = int_to_ptr.vmem [resolvable:$true] %s27_s24 }
  0x15   :  { %p663_p9 = scmp.lt.u32.totalorder %s659_s27, %s790_s1 }
  0x17   :  { %p665_p10 = pnand %p663_p9, %p660_p8 }
  0x19   :  { %668 = shalt.err (!%p665_p10)
}
  0x1a   :  { %s669_s4 = scalar_lea.vmem %s28_s24, 1536  ;;  %p674_p12 = scmp.lt.s32.totalorder %s28_s24, %s28_s24 }
  0x1b   :  { %p670_p11 = scmp.ne.s32.totalorder %s28_s24, %s669_s4  ;;  %p675_p13 = scmp.lt.s32.totalorder %s669_s4, %s669_s4 }
  0x1d   :  { %p676_p0 = por %p675_p13, %p674_p12 }
  0x1f   :  { %p677_p1 = pnand %p676_p0, %p670_p11 }
  0x21   :  { %680 = shalt.err (!%p677_p1)
}
  0x22   :  { %s713_s0 = smov 384   ;;  %s714_s5 = smov 24  }
  0x23   :  { %33 = dma.hbm_to_vmem [thread:$0]  %s790_s1, 1536, %s28_s24, [#allocation6], %s713_s0, %s713_s0, %s714_s5  }
  0x24   :  { %703 = dma.done.wait [#allocation3], 256  }
  0x25   :  { %704 = vsyncadd [#allocation3], 4294967040 }
  0x26   :  { %705 = dma.done.wait [#allocation6], 1536  }
  0x27   :  { %706 = vsyncadd [#allocation6], 4294965760  ;;  %v715_v0 = vmov 0.0   ;;  %v43_v1 = vld [vmem:[#allocation5 + $0x8] sm:$0xff]  ;;  %v46_v2 = vld [vmem:[#allocation5 + $0x20] sm:$0xff]  ;;  %vm54_vm0 = vcmask 261120   ;;  %v355_v27 = vlaneseq }
  0x28   :  { %125 = vmatprep.mubr.f32.mxu0 %v715_v0  ;;  %v42_v3 = vld [vmem:[#allocation5] sm:$0xff]  ;;  %v604_v4 = vpack.c.bf16 %v46_v2, %v43_v1  ;;  %v45_v5 = vld [vmem:[#allocation5 + $0x18] sm:$0xff]  ;;  %v52_v7 = vld [vmem:[#allocation5 + $0x50] sm:$0xff]  ;;  %vm716_vm1 = vmmov 0   ;;  %vm364_vm3 = vcmask 64512   ;;  %s717_s1 = smov [#allocation7]  }
  0x29   :  { %v49_v6 = vld [vmem:[#allocation5 + $0x38] sm:$0xff]  ;;  %v606_v8 = vpack.c.bf16 %v45_v5, %v42_v3  ;;  %v48_v10 = vld [vmem:[#allocation5 + $0x30] sm:$0xff]  ;;  %v51_v11 = vld [vmem:[#allocation5 + $0x48] sm:$0xff]  ;;  %v356_v28 = vshrl.u32 %v355_v27, 7  ;;  %v358_v29 = vand.u32 127, %v355_v27  ;;  %s540_s8 = sshll.u32 %s717_s1, 4  ;;  %s541_s8 = int_to_ptr.vmem [resolvable:$true] %s540_s8 }
  0x2a   :  { %v608_v9 = vpack.c.bf16 %v52_v7, %v49_v6  ;;  %v40_v12 = vld [vmem:[#allocation2] sm:$0xff]  ;;  %605 = vmatprep.subr.bf16.mxu0 %v604_v4  ;;  %v47_v14 = vld [vmem:[#allocation5 + $0x28] sm:$0xff]  ;;  %v610_v15 = vpack.c.bf16 %v51_v11, %v48_v10  ;;  %v50_v17 = vld [vmem:[#allocation5 + $0x40] sm:$0xff]  ;;  %s681_s9 = scalar_lea.vmem %s541_s8, 256  ;;  %p686_p3 = scmp.lt.s32.totalorder %s541_s8, %s541_s8 }
  0x2b   :  { %v44_v13 = vld [vmem:[#allocation5 + $0x10] sm:$0xff]  ;;  %581 = vmatprep.mubr.msk.f32.mxu1 %vm54_vm0, %v40_v12  ;;  %607 = vmatpush1.bf16.msra.mxu0 %v606_v8  ;;  %v53_v18 = vld [vmem:[#allocation5 + $0x58] sm:$0xff]  ;;  %vm359_vm2 = vcmp.le.s32.totalorder %v358_v29, %v356_v28  ;;  %p682_p2 = scmp.ne.s32.totalorder %s541_s8, %s681_s9  ;;  %p687_p4 = scmp.lt.s32.totalorder %s681_s9, %s681_s9 }
  0x2c   :  { %v612_v16 = vpack.c.bf16 %v47_v14, %v44_v13  ;;  %609 = vmatprep.subr.bf16.mxu0 %v608_v9  ;;  %v616_v19 = vpack.c.bf16 %v53_v18, %v50_v17  ;;  %v41_v20 = vld [vmem:[#allocation2 + $0x8] sm:$0xff] }
  0x2d   :  { %p688_p5 = por %p687_p4, %p686_p3 }
  0x2e   :  { %613 = vmatprep.subr.bf16.mxu1 %v612_v16 }
  0x2f   :  { %615 = vmatpush3.bf16.msra.mxu1 %v612_v16  ;;  %611 = vmatpush1.bf16.msra.mxu0 %v610_v15  ;;  %p689_p6 = pnand %p688_p5, %p682_p2 }
  0x30   :  { %617 = vmatprep.subr.bf16.mxu1 %v616_v19  ;;  %589 = vmatprep.subr.mxu0 %v715_v0 }
  0x32   :  { %553 = vmatmul.mubr.msk.f32.vlgmr.msra.gmra.mrb[0].mxu0 %vm54_vm0, %v40_v12 }
  0x33   :  { %619 = vmatpush3.bf16.msra.mxu1 %v616_v19  ;;  %131 = vmatprep.mubr.f32.mxu0 %v715_v0 }
  0x34   :  { %584 = vmatprep.subr.mxu1 %v715_v0 }
  0x36   :  { %582 = vmatmul.mubr.msk.f32.vlgmr.msra.gmra.mrb[0].mxu1 %vm54_vm0, %v41_v20  ;;  %554 = vmatmul.mubr.msk.f32.gmra.mrb[2].mxu0 %vm54_vm0, %v41_v20 }
  0x37   :  { %586 = vmatprep.mubr.msk.f32.mxu1 %vm716_vm1, %v715_v0  ;;  %591 = vmatprep.mubr.msk.f32.mxu0 %vm716_vm1, %v715_v0 }
 0x105   :  { %v127_v21 = vpop.f32.mrb[0].mxu0 }
 0x106   :  { %v129_v22 = vpop.f32.mrb[1].mxu0 }
 0x107   :  { %585 = vmatpush3.xpose.msra.mxu1 %v129_v22 }
 0x108   :  { %594 = vmatprep.subr.mxu1 %v715_v0 }
 0x109   :  { %v583_v23 = vpop.f32.mrb[0].mxu1  ;;  %v133_v24 = vpop.f32.mrb[2].mxu0 }
 0x10a   :  { %v204_v25 = vpop.f32.mrb[1].mxu1  ;;  %v135_v26 = vpop.f32.mrb[3].mxu0  ;;  %587 = vmatmul.mubr.f32.vlgmr.msra.gmra.mrb[2].mxu1 %v127_v21 }
 0x10b   :  { %590 = vmatpush3.xpose.msra.mxu0 %v135_v26  ;;  %595 = vmatpush3.msra.mxu1 %v204_v25 }
 0x10c   :  { %599 = vmatprep.subr.mxu0 %v715_v0  ;;  %596 = vmatprep.mubr.msk.f32.mxu1 %vm716_vm1, %v715_v0 }
 0x10e   :  { %592 = vmatmul.mubr.f32.vlgmr.msra.gmra.mrb[4].mxu0 %v133_v24 }
 0x10f   :  { %600 = vmatpush3.msra.mxu0 %v583_v23  ;;  %601 = vmatprep.mubr.msk.f32.mxu0 %vm716_vm1, %v715_v0 }
 0x1dd   :  { %v279_v30 = vpop.f32.mrb[2].mxu1 }
 0x1de   :  { %v353_v31 = vmul.f32 0.17677669, %v279_v30  ;;  %v588_v32 = vpop.f32.mrb[3].mxu1 }
 0x1e0   :  { %v362_v33 = vsel %vm359_vm2, %v353_v31, -3.4028235e+38 }
 0x1e1   :  { %v349_v34 = vpop.f32.mrb[4].mxu0  ;;  %v365_v35 = vsel %vm364_vm3, %v362_v33, -inf }
 0x1e2   :  { %v354_v36 = vmul.f32 0.17677669, %v349_v34  ;;  %366 = vmax.xlane.f32.xlu0 %v365_v35  ;;  %v593_v37 = vpop.f32.mrb[5].mxu0 }
 0x1e4   :  { %v363_v38 = vsel %vm359_vm2, %v354_v36, -3.4028235e+38 }
 0x1e5   :  { %v368_v39 = vsel %vm364_vm3, %v363_v38, -inf }
 0x1e6   :  { %369 = vmax.xlane.f32.xlu0 %v368_v39 }
 0x26f   :  { %v367_v40 = vpop.xlane.xlu0 %366 }
 0x270   :  { %v371_v41 = vsub.f32 %v362_v33, %v367_v40 }
 0x272   :  { %v373_v42 = vmul.f32 1.442695, %v371_v41 }
 0x273   :  { %v370_v43 = vpop.xlane.xlu0 %369 }
 0x274   :  { %629 = vpow2.f32 %v373_v42  ;;  %v372_v44 = vsub.f32 %v363_v38, %v370_v43 }
 0x276   :  { %v375_v45 = vmul.f32 1.442695, %v372_v44 }
 0x278   :  { %631 = vpow2.f32 %v375_v45 }
 0x27e   :  { %v630_v46 = vpop.eup %629 }
 0x27f   :  { %v377_v47 = vsel %vm364_vm3, %v630_v46, 0.0 }
 0x280   :  { %378 = vadd.xlane.f32.xlu1 %v377_v47 }
 0x282   :  { %v632_v48 = vpop.eup %631 }
 0x283   :  { %v380_v49 = vsel %vm364_vm3, %v632_v48, 0.0 }
 0x284   :  { %381 = vadd.xlane.f32.xlu1 %v380_v49 }
 0x30d   :  { %v379_v50 = vpop.xlane.xlu1 %378 }
 0x30e   :  { %633 = vrcp.f32 %v379_v50 }
 0x311   :  { %v382_v51 = vpop.xlane.xlu1 %381 }
 0x312   :  { %635 = vrcp.f32 %v382_v51 }
 0x318   :  { %v634_v52 = vpop.eup %633 }
 0x319   :  { %v384_v53 = vmul.f32 %v634_v52, %v630_v46 }
 0x31b   :  { %597 = vmatmul.mubr.msk.f32.vlgmr.msra.gmra.mrb[4].mxu1 %vm364_vm3, %v384_v53 }
 0x31c   :  { %v636_v54 = vpop.eup %635 }
 0x31d   :  { %v386_v55 = vmul.f32 %v636_v54, %v632_v48 }
 0x31f   :  { %602 = vmatmul.mubr.msk.f32.vlgmr.msra.gmra.mrb[6].mxu0 %vm364_vm3, %v386_v55 }
 0x3ee   :  { %v456_v56 = vpop.f32.mrb[4].mxu1 }
 0x3ef   :  { %533 = vst [vmem:[#allocation7] sm:$0xff] %v456_v56  ;;  %v598_v57 = vpop.f32.mrb[5].mxu1 }
 0x3f2   :  { %v529_v58 = vpop.f32.mrb[6].mxu0 }
 0x3f3   :  { %534 = vst [vmem:[#allocation7 + $0x8] sm:$0xff] %v529_v58  ;;  %v603_v59 = vpop.f32.mrb[7].mxu0 }
 0x3f4   :  { %692 = shalt.err (!%p689_p6)
}
 0x3f5   :  { %s693_s12 = scalar_lea.hbm %s791_s2, 256 }
 0x3f6   :  { %p694_p7 = scmp.ne.s32.totalorder %s791_s2, %s693_s12  ;;  %p697_p8 = scmp.lt.u32.totalorder %s693_s12, %s791_s2 }
 0x3f8   :  { %p699_p9 = pnand %p697_p8, %p694_p7 }
 0x3fa   :  { %702 = shalt.err (!%p699_p9)
}
 0x3fb   :  { %546 = dma.vmem_to_hbm [thread:$0]  %s541_s8, 256, %s791_s2, [#allocation4], %s710_s19, %s710_s19, %s711_s20  }
 0x3fc   :  { %707 = dma.done.wait [#allocation4], 256  }
 0x3fd   :  { %708 = vsyncadd [#allocation4], 4294967040 }
 0x3fe   :  { %550 = vsyncpa [#allocation3], 1 }
 0x3ff   :  { %551 = vsyncpa [#allocation6], 1 }
 0x400   :  { %552 = vsyncpa [#allocation4], 1 }

</bundles_post_ra>
